<compile_context>
chip_gen: v7x
topology: tpu7x:2x2x1
jax: 0.10.0
libtpu: 0.0.40
codegen_flags: <defaults>
</compile_context>

<pallas_src>
import functools

import jax
import jax.numpy as jnp
from jax import lax
from jax.experimental import pallas as pl
from jax.experimental.pallas import tpu as pltpu


def _round_up(x, m):
    return (x + m - 1) // m * m


def _vmem_budget_bytes():
    """~75% of physical VMEM (128 MiB on v5e/v6e, 64 MiB on v7x); safe fallback."""
    cap = 64 * 1024 * 1024
    try:
        cap = int(getattr(pltpu.get_tpu_info(), "vmem_capacity_bytes", cap))
    except Exception:
        pass
    return (cap // 4) * 3


# ---------------------------------------------------------------------------
# Stage 0: row-wise L2 normalization -> bf16 (shared by features and weights).
# ---------------------------------------------------------------------------
def _l2norm_bf16_kernel(x_ref, o_ref):
    # torch F.normalize(p=2, dim=1, eps=1e-12): x / max(||x||, 1e-12)
    #   == x * rsqrt(max(sum(x*x), 1e-24))
    x = x_ref[...].astype(jnp.float32)
    inv = lax.rsqrt(jnp.maximum(jnp.sum(x * x, axis=1, keepdims=True), 1e-24))
    o_ref[...] = (x * inv).astype(jnp.bfloat16)


def _l2norm_rows_bf16(x, row_tile, out_rows, vmem_limit):
    rows, d = x.shape
    return pl.pallas_call(
        _l2norm_bf16_kernel,
        out_shape=jax.ShapeDtypeStruct((out_rows, d), jnp.bfloat16),
        grid=(pl.cdiv(rows, row_tile),),
        in_specs=[pl.BlockSpec((row_tile, d), lambda i: (i, 0))],
        out_specs=pl.BlockSpec((row_tile, d), lambda i: (i, 0)),
        compiler_params=pltpu.CompilerParams(
            dimension_semantics=("parallel",),
            vmem_limit_bytes=vmem_limit),
    )(x)


# ---------------------------------------------------------------------------
# Stage 1: streamed CosFace loss over (B tiles x C tiles).
# ---------------------------------------------------------------------------
def _cosface_kernel(feat_ref, wn_ref, labels_ref, loss_ref,
                    m_ref, l_ref, gt_ref,
                    *, scale, margin, num_classes, tile_c, ragged_c):
    j = pl.program_id(1)
    last_j = pl.num_programs(1) - 1

    @pl.when(j == 0)
    def _init():
        m_ref[...] = jnp.full(m_ref.shape, -1e30, jnp.float32)
        l_ref[...] = jnp.zeros(l_ref.shape, jnp.float32)
        gt_ref[...] = jnp.zeros(gt_ref.shape, jnp.float32)

    # (tb, tc) cosine tile: bf16 operands on the MXU, f32 accumulation;
    # contract dim 1 of both operands so the row-major weight tile needs no
    # explicit transpose.
    cos = lax.dot_general(
        feat_ref[...], wn_ref[...],
        dimension_numbers=(((1,), (1,)), ((), ())),
        preferred_element_type=jnp.float32)
    tb, tc = cos.shape

    # Local class index inside this tile; the global offset j*tile_c is folded
    # into the (tb, 1) label instead of a per-element add.
    col = lax.broadcasted_iota(jnp.int32, (tb, tc), 1)
    is_gt = col == (labels_ref[...] - j * tile_c)

    def _accumulate(mask_tail):
        s = scale * cos
        if mask_tail:
            # Only the last C tile can contain padded / garbage class rows.
            is_valid = col < (num_classes - j * tile_c)
            s_max = jnp.where(is_valid, s, -1e30)
            keep = jnp.logical_and(is_valid, jnp.logical_not(is_gt))
        else:
            s_max = s
            keep = jnp.logical_not(is_gt)

        # Ground-truth cosine (exactly one C tile contributes per row).
        gt_ref[...] += jnp.sum(jnp.where(is_gt, cos, 0.0), axis=1, keepdims=True)

        # Online logsumexp over the valid, non-ground-truth classes.
        m_old = m_ref[...]
        m_new = jnp.maximum(m_old, jnp.max(s_max, axis=1, keepdims=True))
        p = jnp.where(keep, jnp.exp(s - m_new), 0.0)
        l_ref[...] = (jnp.exp(m_old - m_new) * l_ref[...]
                      + jnp.sum(p, axis=1, keepdims=True))
        m_ref[...] = m_new

    if ragged_c:
        @pl.when(j != last_j)
        def _body():
            _accumulate(False)

        @pl.when(j == last_j)
        def _tail():
            _accumulate(True)
    else:
        _accumulate(False)

    @pl.when(j == last_j)
    def _finalize():
        # loss = -log(exp(z) / (exp(z) + sum_{c != gt} exp(scale*cos_c)))
        #      = log(exp(z - m) + l) + m - z,  with z = scale*(gt_cos - margin)
        # and m >= scale*gt_cos >= z, so every exp argument is <= 0 (stable).
        z = scale * (gt_ref[...] - margin)
        m = m_ref[...]
        loss_ref[...] = jnp.log(jnp.exp(z - m) + l_ref[...]) + m - z


def cosface_loss(features, weight, labels, *, scale=30.0, margin=0.35):
    """features (B, D) f32, weight (C, D) f32, labels (B,) int -> scalar f32."""
    B, D = features.shape
    C, Dw = weight.shape
    assert D == Dw

    # ---- tile sizing --------------------------------------------------------
    # Batch tile: a single B tile for B <= 256 so the class weights stream from
    # HBM exactly once per call; 256-row tiles (and >=2 parallel tiles for v7x
    # megacore) for larger batches.
    tb = _round_up(B, 8) if B <= 256 else 256
    b_grid = pl.cdiv(B, tb)
    b_pad = b_grid * tb

    # Class tile: as large as the explicit VMEM budget allows (amortizes the
    # ~0.35us per-grid-step overhead), capped at 8192.
    budget = _vmem_budget_bytes()
    per_class = 4 * D + 24 * tb            # 2x bf16 weight bufs + ~6 f32 temporaries
    fixed = 4 * tb * D + 64 * 1024         # bf16 feature double-buffer + slack
    raw = (budget - fixed) // per_class
    tc_budget = max(128, min(8192, raw // 128 * 128))
    if C <= tc_budget:
        tc = _round_up(C, 8)               # single C tile
    else:
        tc = tc_budget
    c_grid = pl.cdiv(C, tc)
    c_pad = c_grid * tc
    ragged_c = c_pad != C                  # last C tile holds padded/garbage rows

    # Weight-prenorm row tile: small so its f32 double buffer stays cheap.
    tw = min(512, c_pad)

    # ---- stage 0: L2-normalize rows once, emit bf16 (no HBM pad copies) -----
    f_n = _l2norm_rows_bf16(features.astype(jnp.float32), tb, b_pad, budget)
    w_n = _l2norm_rows_bf16(weight.astype(jnp.float32), tw, c_pad, budget)

    lab_p = jnp.zeros((b_pad, 1), jnp.int32).at[:B, 0].set(labels.astype(jnp.int32))

    # ---- stage 1: streamed CosFace loss --------------------------------------
    kernel = functools.partial(
        _cosface_kernel, scale=float(scale), margin=float(margin),
        num_classes=C, tile_c=tc, ragged_c=bool(ragged_c))
    per_row = pl.pallas_call(
        kernel,
        out_shape=jax.ShapeDtypeStruct((b_pad, 1), jnp.float32),
        grid=(b_grid, c_grid),
        in_specs=[
            pl.BlockSpec((tb, D), lambda i, j: (i, 0)),    # normalized feats (bf16)
            pl.BlockSpec((tc, D), lambda i, j: (j, 0)),    # normalized weights (bf16)
            pl.BlockSpec((tb, 1), lambda i, j: (i, 0)),    # labels
        ],
        out_specs=pl.BlockSpec((tb, 1), lambda i, j: (i, 0)),
        scratch_shapes=[
            pltpu.VMEM((tb, 1), jnp.float32),              # running max
            pltpu.VMEM((tb, 1), jnp.float32),              # running sum_exp (no gt)
            pltpu.VMEM((tb, 1), jnp.float32),              # gt cosine
        ],
        compiler_params=pltpu.CompilerParams(
            dimension_semantics=("parallel", "arbitrary"),
            vmem_limit_bytes=budget),
    )(f_n, w_n, lab_p)

    return jnp.mean(per_row[:B, 0])


# ---------------------------------------------------------------------------
# Pure-JAX reference (mirrors the torch module) and demo.
# ---------------------------------------------------------------------------
def _reference_loss(features, weight, labels, scale, margin):
    f = features / jnp.maximum(jnp.linalg.norm(features, axis=1, keepdims=True), 1e-12)
    w = weight / jnp.maximum(jnp.linalg.norm(weight, axis=1, keepdims=True), 1e-12)
    cos = f @ w.T
    b = features.shape[0]
    gt = cos[jnp.arange(b), labels]
    z = scale * (gt - margin)
    exp_logits = jnp.exp(scale * cos)
    s = exp_logits.sum(axis=1) - exp_logits[jnp.arange(b), labels]
    return jnp.mean(-jnp.log(jnp.exp(z) / (jnp.exp(z) + s)))


def xavier_uniform(key, shape, dtype=jnp.float32):
    fan_out, fan_in = shape  # (num_classes, feat_dim), nn.Linear-style weight
    bound = (6.0 / (fan_in + fan_out)) ** 0.5
    return jax.random.uniform(key, shape, dtype=dtype, minval=-bound, maxval=bound)


if __name__ == "__main__":
    B, D, C = 8, 32, 16          # batch, feat_dim, num_classes
    key = jax.random.PRNGKey(0)
    k_feat, k_w, k_lab = jax.random.split(key, 3)

    features = jax.random.normal(k_feat, (B, D), dtype=jnp.float32)
    weight = xavier_uniform(k_w, (C, D))
    labels = jax.random.randint(k_lab, (B,), 0, C, dtype=jnp.int32)

    loss = cosface_loss(features, weight, labels, scale=30.0, margin=0.35)
    jax.block_until_ready(loss)

    ref = _reference_loss(features, weight, labels, 30.0, 0.35)
    assert bool(jnp.isfinite(loss)), float(loss)
    # bf16 normalized inputs quantize the cosine -> compare with tolerance.
    assert abs(float(loss) - float(ref)) <= 0.05 + 0.05 * abs(float(ref)), (
        float(loss), float(ref))
    print("KERNEL_OK")
</pallas_src>

<mosaic_0001>
module attributes {stable_mosaic.version = 11 : i64} {
  func.func @_l2norm_bf16_kernel(%arg0: i32, %arg1: memref<8x32xf32, #tpu.memory_space<vmem>>, %arg2: memref<8x32xbf16, #tpu.memory_space<vmem>>) attributes {dimension_semantics = [#tpu.dimension_semantics<parallel>], iteration_bounds = array<i64: 1>, scalar_prefetch = 0 : i64, scratch_operands = 0 : i64, tpu.core_type = #tpu.core_type<tc>, window_params = [{transform_indices = @transform_0, window_bounds = array<i64: 8, 32>}, {transform_indices = @transform_1, window_bounds = array<i64: 8, 32>}]} {
    %c0 = arith.constant 0 : index
    %c0_0 = arith.constant 0 : index
    %0 = vector.load %arg1[%c0, %c0_0] : memref<8x32xf32, #tpu.memory_space<vmem>>, vector<8x32xf32>
    %1 = arith.mulf %0, %0 : vector<8x32xf32>
    %cst = arith.constant dense<0.000000e+00> : vector<8xf32>
    %2 = vector.multi_reduction <add>, %1, %cst [1] : vector<8x32xf32> to vector<8xf32>
    %3 = vector.shape_cast %2 : vector<8xf32> to vector<8x1xf32>
    %cst_1 = arith.constant 1.000000e-24 : f32
    %4 = vector.broadcast %cst_1 : f32 to vector<8x1xf32>
    %5 = arith.maximumf %3, %4 : vector<8x1xf32>
    %6 = math.rsqrt %5 : vector<8x1xf32>
    %7 = vector.broadcast %6 : vector<8x1xf32> to vector<8x32xf32>
    %8 = arith.mulf %0, %7 : vector<8x32xf32>
    %9 = arith.truncf %8 : vector<8x32xf32> to vector<8x32xbf16>
    %c0_2 = arith.constant 0 : index
    %c0_3 = arith.constant 0 : index
    %10 = vector.load %arg2[%c0_2, %c0_3] : memref<8x32xbf16, #tpu.memory_space<vmem>>, vector<8x32xbf16>
    tpu.vector_store %arg2[%c0_2, %c0_3], %9 {strides = array<i32>} : memref<8x32xbf16, #tpu.memory_space<vmem>>, vector<8x32xbf16>,
    return
  }
  func.func @transform_0(%arg0: i32) -> (i32, i32) {
    %c0_i32 = arith.constant 0 : i32
    %c0_i32_0 = arith.constant 0 : i32
    return %arg0, %c0_i32 : i32, i32
  }
  func.func @transform_1(%arg0: i32) -> (i32, i32) {
    %c0_i32 = arith.constant 0 : i32
    %c0_i32_0 = arith.constant 0 : i32
    return %arg0, %c0_i32 : i32, i32
  }
}

</mosaic_0001>

<bundles_post_ra>
// kernel: tpu_custom_call.1
= control target key start
LH: loop header
LB: loop body
LE: loop exit
PB: predicated region body
PF: predicated region fallthrough
CT: control target
= control target key end

     0   :  { %6 = vsyncpa [#allocation3], 0  ;;  %s136_s0 = inlined_call_operand.hbm [shape: f32[8,32], index: 0, kind: input, shape index: {}]   ;;  %s137_s1 = inlined_call_operand.hbm [shape: bf16[8,32], index: 1, kind: output, shape index: {}]  }
   0x1   :  { %7 = vsyncpa [#allocation4], 0  ;;  %s100_s6 = smov [#allocation2]   ;;  %s52_s10 = scalar_lea.hbm %s136_s0, 128 }
   0x2   :  { %s14_s7 = sshll.u32 %s100_s6, 4  ;;  %p53_p0 = scmp.ne.s32.totalorder %s136_s0, %s52_s10  ;;  %s15_s7 = int_to_ptr.vmem [resolvable:$true] %s14_s7 }
   0x3   :  { %p56_p1 = scmp.lt.u32.totalorder %s52_s10, %s136_s0 }
   0x5   :  { %p58_p2 = pnand %p56_p1, %p53_p0 }
   0x7   :  { %61 = shalt.err (!%p58_p2)
}
   0x8   :  { %s62_s15 = scalar_lea.vmem %s15_s7, 128  ;;  %p67_p4 = scmp.lt.s32.totalorder %s15_s7, %s15_s7 }
   0x9   :  { %p63_p3 = scmp.ne.s32.totalorder %s15_s7, %s62_s15  ;;  %p68_p5 = scmp.lt.s32.totalorder %s62_s15, %s62_s15 }
   0xb   :  { %p69_p6 = por %p68_p5, %p67_p4 }
   0xd   :  { %p70_p7 = pnand %p69_p6, %p63_p3 }
   0xf   :  { %73 = shalt.err (!%p70_p7)
}
  0x10   :  { %17 = dma.hbm_to_vmem [thread:$0]  %s136_s0, 128, %s15_s7, [#allocation3]  }
  0x11   :  { %96 = dma.done.wait [#allocation3], 128  }
  0x12   :  { %97 = vsyncadd [#allocation3], 4294967168  ;;  %v21_v0 = vld [vmem:[#allocation2] sm:$0xff]  ;;  %vm23_vm0 = vcmask 261120   ;;  %s101_s18 = smov [#allocation5]   ;;  %vm31_vm1 = vcmask 257024  }
  0x13   :  { %v22_v1 = vmul.f32 %v21_v0, %v21_v0  ;;  %s39_s19 = sshll.u32 %s101_s18, 4  ;;  %s40_s19 = int_to_ptr.vmem [resolvable:$true] %s39_s19 }
  0x14   :  { %s74_s20 = scalar_lea.vmem %s40_s19, 64  ;;  %p79_p9 = scmp.lt.s32.totalorder %s40_s19, %s40_s19 }
  0x15   :  { %v24_v2 = vsel %vm23_vm0, %v22_v1, 0.0  ;;  %p75_p8 = scmp.ne.s32.totalorder %s40_s19, %s74_s20  ;;  %p80_p10 = scmp.lt.s32.totalorder %s74_s20, %s74_s20 }
  0x16   :  { %25 = vadd.xlane.f32.xlu0 %v24_v2 }
  0x17   :  { %p81_p11 = por %p80_p10, %p79_p9 }
  0x19   :  { %p82_p12 = pnand %p81_p11, %p75_p8 }
  0xa3   :  { %v26_v3 = vpop.xlane.xlu0 %25 }
  0xa4   :  { %v27_v4 = vmax.f32 %v26_v3, 1e-24 }
  0xa6   :  { %50 = vrsqrt.f32 %v27_v4 }
  0xb0   :  { %v51_v5 = vpop.eup %50 }
  0xb1   :  { %v29_v6 = vmul.f32 %v51_v5, %v21_v0 }
  0xb3   :  { %v30_v7 = vpack.c.bf16 %v29_v6, %v29_v6 }
  0xb5   :  { %32 = vst.msk [vmem:[#allocation5] sm:$0xf] %vm31_vm1, %v30_v7 }
  0xb6   :  { %85 = shalt.err (!%p82_p12)
}
  0xb7   :  { %s86_s22 = scalar_lea.hbm %s137_s1, 64 }
  0xb8   :  { %p87_p13 = scmp.ne.s32.totalorder %s137_s1, %s86_s22  ;;  %p90_p0 = scmp.lt.u32.totalorder %s86_s22, %s137_s1 }
  0xba   :  { %p92_p1 = pnand %p90_p0, %p87_p13 }
  0xbc   :  { %95 = shalt.err (!%p92_p1)
}
  0xbd   :  { %42 = dma.vmem_to_hbm [thread:$0]  %s40_s19, 64, %s137_s1, [#allocation4]  }
  0xbe   :  { %98 = dma.done.wait [#allocation4], 64  }
  0xbf   :  { %99 = vsyncadd [#allocation4], 4294967232 }
  0xc0   :  { %46 = vsyncpa [#allocation3], 1 }
  0xc1   :  { %47 = vsyncpa [#allocation4], 1 }

</bundles_post_ra>
